<compile_context>
chip_gen: v6e
topology: v6e:2x2x1
jax: 0.10.0
libtpu: 0.0.40
codegen_flags: <defaults>
</compile_context>

<pallas_src>
import functools

import jax
import jax.numpy as jnp
from jax import lax
from jax.experimental import pallas as pl
from jax.experimental.pallas import tpu as pltpu

SELU_ALPHA = 1.6732632423543772848170429916717
SELU_SCALE = 1.0507009873554804934193349852946
BN_EPS = 1e-5


def _inception_kernel(x_ref, w_ref, b_ref, o_ref, *, d_taps, l_out):
    """Fused multi-branch conv1d + folded-BN bias + SELU for one sample.

    x_ref: (L_d, S*C_in)         bf16  stride-de-interleaved input
    w_ref: (D, S*C_in, C_total)  bf16  BN-scaled, branch-fused weights
    b_ref: (1, C_total)          f32   fused conv-bias + BN bias
    o_ref: (L_out, C_total)            already channel-concatenated output
    """
    c_total = w_ref.shape[-1]
    acc = jnp.zeros((l_out, c_total), jnp.float32)
    # Static unroll over the D = ceil(k_max / S) "super-taps".  Each tap is a
    # unit-stride sublane slice feeding one MXU matmul with f32 accumulation.
    for d in range(d_taps):
        xs = x_ref[pl.ds(d, l_out), :]
        acc = acc + jnp.dot(xs, w_ref[d], preferred_element_type=jnp.float32)

    y = acc + b_ref[...]                          # (l_out, C_total) + (1, C_total)
    # SELU. Clamp the exp argument so the unselected (positive) branch cannot
    # overflow; exp(min(y,0)) - 1 is used instead of expm1 (expm1 lowering is
    # not guaranteed in Mosaic; f32 abs error near 0 is ~1 ulp).
    neg = SELU_ALPHA * (jnp.exp(jnp.minimum(y, 0.0)) - 1.0)
    y = SELU_SCALE * jnp.where(y > 0.0, y, neg)
    o_ref[...] = y.astype(o_ref.dtype)


def _build_fused_weights(branch_params, stride, c_in, k_max):
    """Fold BN into the conv weights and pack all branches into one tensor."""
    s = stride
    d_taps = -(-k_max // s)                       # number of "super-taps"
    w_all, b_all = [], []
    for (w, conv_b, gamma, beta, mean, var) in branch_params:
        c_out, _, k_b = w.shape
        scale = gamma / jnp.sqrt(var + BN_EPS)                  # (C_out,)
        w_s = (w * scale[:, None, None]).astype(jnp.float32)    # BN folded in
        w_t = jnp.transpose(w_s, (2, 1, 0))                     # (k_b, C_in, C_out)
        w_t = jnp.pad(w_t, ((0, d_taps * s - k_b), (0, 0), (0, 0)))  # zero taps
        w_t = w_t.reshape(d_taps, s * c_in, c_out)              # (D, S*C_in, C_out)
        w_all.append(w_t)
        b_all.append((conv_b - mean) * scale + beta)
    w_fused = jnp.concatenate(w_all, axis=-1).astype(jnp.bfloat16)
    bias_fused = jnp.concatenate(b_all, axis=-1)[None, :].astype(jnp.float32)
    return w_fused, bias_fused                                  # (D,S*Cin,Ct),(1,Ct)


def inception_block_pallas(x_ncl, branch_params, stride):
    """x_ncl: (N, C_in, L) like PyTorch. Returns (N, n_branches*C_out, L_out)."""
    n, c_in, l = x_ncl.shape
    kernel_sizes = [p[0].shape[2] for p in branch_params]
    k_max = max(kernel_sizes)
    s = stride
    l_out = (l - k_max) // s + 1
    for k_b in kernel_sizes:
        # torch.cat(dim=1) requires every branch to produce the same L_out.
        assert (l - k_b) // s + 1 == l_out, "branches must share L_out"
    c_out = branch_params[0][0].shape[0]
    c_total = len(branch_params) * c_out
    d_taps = -(-k_max // s)

    # NCL -> NLC (channels on the lane axis).
    x_nlc = jnp.transpose(x_ncl, (0, 2, 1))
    # De-interleave the conv stride with a free reshape (pad L to a multiple
    # of S first; the padded tail is never read by any valid output position).
    l_pad = -(-l // s) * s
    if l_pad != l:
        x_nlc = jnp.pad(x_nlc, ((0, 0), (0, l_pad - l), (0, 0)))
    l_d = l_pad // s
    x_d = x_nlc.reshape(n, l_d, s * c_in).astype(jnp.bfloat16)

    w_fused, bias_fused = _build_fused_weights(branch_params, s, c_in, k_max)

    # Advisory cost hint for XLA's scheduler around the custom call.
    flops = 2 * n * l_out * d_taps * (s * c_in) * c_total
    bytes_accessed = (x_d.size * 2 + w_fused.size * 2 + bias_fused.size * 4
                      + n * l_out * c_total * x_ncl.dtype.itemsize)
    cost = pl.CostEstimate(flops=flops,
                           transcendentals=n * l_out * c_total,
                           bytes_accessed=bytes_accessed)

    kernel = functools.partial(_inception_kernel, d_taps=d_taps, l_out=l_out)
    y_nlc = pl.pallas_call(
        kernel,
        out_shape=jax.ShapeDtypeStruct((n, l_out, c_total), x_ncl.dtype),
        grid=(n,),
        in_specs=[
            pl.BlockSpec((None, l_d, s * c_in), lambda i: (i, 0, 0)),        # x
            pl.BlockSpec((d_taps, s * c_in, c_total), lambda i: (0, 0, 0)),  # W (resident)
            pl.BlockSpec((1, c_total), lambda i: (0, 0)),                    # bias (resident)
        ],
        out_specs=pl.BlockSpec((None, l_out, c_total), lambda i: (i, 0, 0)),
        compiler_params=pltpu.CompilerParams(
            dimension_semantics=("parallel",),
            vmem_limit_bytes=32 * 1024 * 1024),
        cost_estimate=cost,
    )(x_d, w_fused, bias_fused)

    return jnp.transpose(y_nlc, (0, 2, 1))        # back to (N, C_total, L_out)


def _reference(x_ncl, branch_params, stride):
    """Pure-JAX f32 reference (conv + BN(eval) + SELU, concat over channels)."""
    outs = []
    for (w, b, g, beta, mean, var) in branch_params:
        y = lax.conv_general_dilated(
            x_ncl, w, window_strides=(stride,), padding='VALID',
            dimension_numbers=('NCH', 'OIH', 'NCH'))
        y = y + b[None, :, None]
        y = (y - mean[None, :, None]) / jnp.sqrt(var[None, :, None] + BN_EPS)
        y = y * g[None, :, None] + beta[None, :, None]
        outs.append(jax.nn.selu(y))
    return jnp.concatenate(outs, axis=1)


if __name__ == "__main__":
    # Small shapes consistent with the module. kernel_sizes (3, 4) with
    # stride 2 give identical L_out for both branches, so torch.cat(dim=1)
    # in the original module is well defined.
    N, C_IN, L = 2, 4, 16
    C_OUT = 8
    KERNEL_SIZES = (3, 4)
    STRIDE = 2

    key = jax.random.PRNGKey(0)
    key, kx = jax.random.split(key)
    x = jax.random.normal(kx, (N, C_IN, L), dtype=jnp.float32)

    branch_params = []
    for ks in KERNEL_SIZES:
        key, kw, kb = jax.random.split(key, 3)
        fan_in = C_IN * ks
        bound = 1.0 / (fan_in ** 0.5)
        w = jax.random.uniform(kw, (C_OUT, C_IN, ks), jnp.float32,
                               minval=-bound, maxval=bound)
        b = jax.random.uniform(kb, (C_OUT,), jnp.float32,
                               minval=-bound, maxval=bound)
        gamma = jnp.ones((C_OUT,), jnp.float32)
        beta = jnp.zeros((C_OUT,), jnp.float32)
        running_mean = jnp.zeros((C_OUT,), jnp.float32)
        running_var = jnp.ones((C_OUT,), jnp.float32)
        branch_params.append((w, b, gamma, beta, running_mean, running_var))

    out = inception_block_pallas(x, branch_params, STRIDE)
    out = jax.block_until_ready(out)

    ref = _reference(x, branch_params, STRIDE)
    l_out = (L - max(KERNEL_SIZES)) // STRIDE + 1
    assert out.shape == (N, len(KERNEL_SIZES) * C_OUT, l_out)
    # Tolerance accounts for bf16 MXU operands (f32 accumulation) in the
    # kernel vs. the all-f32 XLA reference.
    assert jnp.allclose(out, ref, rtol=5e-2, atol=5e-2), "mismatch vs reference"

    print("KERNEL_OK")
</pallas_src>

<mosaic_0001>
module attributes {stable_mosaic.version = 11 : i64} {
  func.func @_inception_kernel(%arg0: i32, %arg1: memref<1x8x8xbf16, #tpu.memory_space<vmem>>, %arg2: memref<2x8x16xbf16, #tpu.memory_space<vmem>>, %arg3: memref<1x16xf32, #tpu.memory_space<vmem>>, %arg4: memref<1x7x16xf32, #tpu.memory_space<vmem>>) attributes {dimension_semantics = [#tpu.dimension_semantics<parallel>], iteration_bounds = array<i64: 2>, scalar_prefetch = 0 : i64, scratch_operands = 0 : i64, tpu.core_type = #tpu.core_type<tc>, window_params = [{transform_indices = @transform_0, window_bounds = array<i64: 1, 8, 8>}, {pipeline_mode = #tpu.pipeline_mode<synchronous>, transform_indices = @transform_1, window_bounds = array<i64: 2, 8, 16>}, {pipeline_mode = #tpu.pipeline_mode<synchronous>, transform_indices = @transform_2, window_bounds = array<i64: 1, 16>}, {transform_indices = @transform_3, window_bounds = array<i64: 1, 7, 16>}]} {
    %cst = arith.constant 0.000000e+00 : f32
    %0 = vector.broadcast %cst : f32 to vector<7x16xf32>
    %c0 = arith.constant 0 : index
    %c0_0 = arith.constant 0 : index
    %c0_1 = arith.constant 0 : index
    %1 = vector.load %arg1[%c0, %c0_0, %c0_1] : memref<1x8x8xbf16, #tpu.memory_space<vmem>>, vector<1x7x8xbf16>
    %2 = vector.shape_cast %1 : vector<1x7x8xbf16> to vector<7x8xbf16>
    %c0_2 = arith.constant 0 : index
    %c0_3 = arith.constant 0 : index
    %c0_4 = arith.constant 0 : index
    %3 = vector.load %arg2[%c0_2, %c0_3, %c0_4] : memref<2x8x16xbf16, #tpu.memory_space<vmem>>, vector<1x8x16xbf16>
    %4 = vector.shape_cast %3 : vector<1x8x16xbf16> to vector<8x16xbf16>
    %cst_5 = arith.constant dense<0.000000e+00> : vector<7x16xf32>
    %5 = tpu.matmul %2, %4, %cst_5 {dimension_numbers = #tpu.dot_dimension_numbers<[1], [0], [0], [1], [0, 0, 1, 1], [], []>} : vector<7x8xbf16>, vector<8x16xbf16>, vector<7x16xf32> -> vector<7x16xf32>
    %6 = arith.addf %0, %5 : vector<7x16xf32>
    %c0_6 = arith.constant 0 : index
    %c1 = arith.constant 1 : index
    %c0_7 = arith.constant 0 : index
    %7 = vector.load %arg1[%c0_6, %c1, %c0_7] : memref<1x8x8xbf16, #tpu.memory_space<vmem>>, vector<1x7x8xbf16>
    %8 = vector.shape_cast %7 : vector<1x7x8xbf16> to vector<7x8xbf16>
    %c1_8 = arith.constant 1 : index
    %c0_9 = arith.constant 0 : index
    %c0_10 = arith.constant 0 : index
    %9 = vector.load %arg2[%c1_8, %c0_9, %c0_10] : memref<2x8x16xbf16, #tpu.memory_space<vmem>>, vector<1x8x16xbf16>
    %10 = vector.shape_cast %9 : vector<1x8x16xbf16> to vector<8x16xbf16>
    %cst_11 = arith.constant dense<0.000000e+00> : vector<7x16xf32>
    %11 = tpu.matmul %8, %10, %cst_11 {dimension_numbers = #tpu.dot_dimension_numbers<[1], [0], [0], [1], [0, 0, 1, 1], [], []>} : vector<7x8xbf16>, vector<8x16xbf16>, vector<7x16xf32> -> vector<7x16xf32>
    %12 = arith.addf %6, %11 : vector<7x16xf32>
    %c0_12 = arith.constant 0 : index
    %c0_13 = arith.constant 0 : index
    %13 = vector.load %arg3[%c0_12, %c0_13] : memref<1x16xf32, #tpu.memory_space<vmem>>, vector<1x16xf32>
    %14 = vector.broadcast %13 : vector<1x16xf32> to vector<7x16xf32>
    %15 = arith.addf %12, %14 : vector<7x16xf32>
    %cst_14 = arith.constant 0.000000e+00 : f32
    %16 = vector.broadcast %cst_14 : f32 to vector<7x16xf32>
    %17 = arith.minimumf %15, %16 : vector<7x16xf32>
    %18 = math.exp %17 : vector<7x16xf32>
    %cst_15 = arith.constant 1.000000e+00 : f32
    %19 = vector.broadcast %cst_15 : f32 to vector<7x16xf32>
    %20 = arith.subf %18, %19 : vector<7x16xf32>
    %cst_16 = arith.constant 1.67326319 : f32
    %21 = vector.broadcast %cst_16 : f32 to vector<7x16xf32>
    %22 = arith.mulf %21, %20 : vector<7x16xf32>
    %cst_17 = arith.constant 0.000000e+00 : f32
    %23 = vector.broadcast %cst_17 : f32 to vector<7x16xf32>
    %24 = arith.cmpf ogt, %15, %23 : vector<7x16xf32>
    %25 = arith.select %24, %15, %22 : vector<7x16xi1>, vector<7x16xf32>
    %cst_18 = arith.constant 1.05070102 : f32
    %26 = vector.broadcast %cst_18 : f32 to vector<7x16xf32>
    %27 = arith.mulf %26, %25 : vector<7x16xf32>
    %c0_19 = arith.constant 0 : index
    %c0_20 = arith.constant 0 : index
    %c0_21 = arith.constant 0 : index
    %28 = vector.load %arg4[%c0_19, %c0_20, %c0_21] : memref<1x7x16xf32, #tpu.memory_space<vmem>>, vector<1x7x16xf32>
    %29 = vector.shape_cast %28 : vector<1x7x16xf32> to vector<7x16xf32>
    %30 = vector.shape_cast %27 : vector<7x16xf32> to vector<1x7x16xf32>
    tpu.vector_store %arg4[%c0_19, %c0_20, %c0_21], %30 {strides = array<i32>} : memref<1x7x16xf32, #tpu.memory_space<vmem>>, vector<1x7x16xf32>,
    return
  }
  func.func @transform_0(%arg0: i32) -> (i32, i32, i32) {
    %c0_i32 = arith.constant 0 : i32
    %c0_i32_0 = arith.constant 0 : i32
    %c0_i32_1 = arith.constant 0 : i32
    return %arg0, %c0_i32, %c0_i32_0 : i32, i32, i32
  }
  func.func @transform_1(%arg0: i32) -> (i32, i32, i32) {
    %c0_i32 = arith.constant 0 : i32
    %c0_i32_0 = arith.constant 0 : i32
    %c0_i32_1 = arith.constant 0 : i32
    %c0_i32_2 = arith.constant 0 : i32
    return %c0_i32, %c0_i32_0, %c0_i32_1 : i32, i32, i32
  }
  func.func @transform_2(%arg0: i32) -> (i32, i32) {
    %c0_i32 = arith.constant 0 : i32
    %c0_i32_0 = arith.constant 0 : i32
    %c0_i32_1 = arith.constant 0 : i32
    return %c0_i32, %c0_i32_0 : i32, i32
  }
  func.func @transform_3(%arg0: i32) -> (i32, i32, i32) {
    %c0_i32 = arith.constant 0 : i32
    %c0_i32_0 = arith.constant 0 : i32
    %c0_i32_1 = arith.constant 0 : i32
    return %arg0, %c0_i32, %c0_i32_0 : i32, i32, i32
  }
}

</mosaic_0001>

<bundles_post_ra>
// kernel: tpu_custom_call.1
= control target key start
LH: loop header
LB: loop body
LE: loop exit
PB: predicated region body
PF: predicated region fallthrough
CT: control target
= control target key end

     0   :  { %8 = vsyncpa [#allocation3], 0  ;;  %s733_s0 = inlined_call_operand.hbm [shape: bf16[2,8,8], index: 0, kind: input, shape index: {}]   ;;  %s734_s1 = inlined_call_operand.hbm [shape: bf16[2,8,16], index: 1, kind: input, shape index: {}]   ;;  %s735_s2 = inlined_call_operand.vmem [shape: f32[1,16], index: 2, kind: input, shape index: {}]   ;;  %s736_s3 = inlined_call_operand.vmem [shape: f32[2,7,16], index: 3, kind: output, shape index: {}]  }
   0x1   :  { %10 = vsyncpa [#allocation3 + $0x1], 0 }
   0x2   :  { %11 = vsyncpa [#allocation5], 0  ;;  %s613_s12 = smov 0   ;;  %s615_s13 = smov 0  }
   0x3   :  { %s617_s14 = smov 0   ;;  %s619_s15 = smov 0  }
   0x4 LB: > { %s632_s16 = sadd.s32 4294967295, %s585_s15   ;;  %p37_p0 = scmp.ne.s32.totalorder %s577_s13, %s573_s12  ;;  %s585_s15 = sphi %s619_s15, %s751_s15   ;;  %s581_s14 = sphi %s617_s14, %s750_s14   ;;  %s577_s13 = sphi %s615_s13, %s749_s13   ;;  %s573_s12 = sphi %s613_s12, %s748_s12  }
   0x5   : > { %p737_p1 = scmp.eq.s32.totalorder %s632_s16, 0  ;;  %p404_p2 = scmp.ge.s32.totalorder %s585_s15, 1 }
   0x6   : > { %p116_p3 = scmp.lt.s32.totalorder %s585_s15, 3  ;;  %s587_s19 = smov [#allocation4]  }
   0x7   : > { %p640_p4 = por %p737_p1, %p37_p0  ;;  %s128_s20 = sshll.u32 %s587_s19, 4  ;;  %s129_s20 = int_to_ptr.vmem [resolvable:$true] %s128_s20 }
   0x8   : > { %p644_p5 = pnand %p404_p2, %p116_p3  ;;  %s657_s22 = sadd.s32 1, %s585_s15  }
   0x9   : > { %s740_s17 = scalar_select %p640_p4, 1, 0 }
   0xa   : > { %s741_s18 = scalar_select %p644_p5, 1, 0 }
   0xb   : > { %p442_p6 = pneg %p644_p5  ;;  %s24_s23 = sadd.s32 1, %s581_s14 }
   0xc   : > { %s21_s24 = ssub.s32 %s585_s15, %s657_s22  ;;  %s504_s25 = scalar_lea.vmem %s129_s20, 128 }
   0xd   : > { %p652_p7 = pnand %p442_p6, %p737_p1  ;;  %p505_p9 = scmp.ne.s32.totalorder %s129_s20, %s504_s25 }
   0xe   : > { %p512_p12 = scmp.lt.s32.totalorder %s129_s20, %s129_s20  ;;  %p513_p13 = scmp.lt.s32.totalorder %s504_s25, %s504_s25 }
   0xf   : > { %p495_p8 = pneg %p652_p7 }
  0x10   : > { %p514_p0 = por %p513_p13, %p512_p12 }
  0x11   : > { %p507_p10 = pnand %p505_p9, %p495_p8 }
  0x13   : > { %p508_p11 = pneg %p507_p10 }
  0x15   : > { %p515_p2 = pnand %p514_p0, %p508_p11 }
  0x17   : > { %518 = shalt.err (!%p515_p2)
}
  0x18   : > { %s588_s26 = smov 64   ;;  %s589_s27 = smov 4  }
  0x19   : > { %445 = dma.hbm_to_vmem [thread:$0]  (!%p652_p7), %s734_s1, 128, %s129_s20, [#allocation5], %s588_s26, %s588_s26, %s589_s27  }
  0x1a   : > { %p22_p3 = scmp.eq.s32.totalorder %s21_s24, 0  ;;  %p31_p6 = scmp.ne.s32.totalorder %s581_s14, %s577_s13 }
  0x1b   : > { %p32_p8 = scmp.eq.s32.totalorder %s585_s15, 0  ;;  %p451_p9 = scmp.lt.s32.totalorder %s585_s15, 2 }
  0x1c   : > { %s674_s30 = scalar_select %p22_p3, %s581_s14, %s24_s23  }
  0x1d   : > { %p33_p10 = por %p32_p8, %p31_p6  ;;  %s145_s4 = sand.u32 1, %s581_s14  }
  0x1e   : > { %s407_s5 = sshll.u32 %s145_s4, 2  ;;  %s408_s6 = sshll.u32 %s585_s15, 6 }
  0x1f   : > { %s681_s9 = scalar_lea.hbm %s733_s0, %s408_s6  ;;  %s149_s10 = scalar_lea.vmem [#allocation2], %s407_s5 }
  0x20   : > { %s156_s11 = sshll.u32 %s149_s10, 4  ;;  %p683_p7 = pnand %p451_p9, %p33_p10  ;;  %s157_s11 = int_to_ptr.vmem [resolvable:$true] %s156_s11 }
  0x21   : > { %s146_s19 = scalar_lea.sflag [#allocation3], %s145_s4  ;;  %s519_s20 = scalar_lea.hbm %s681_s9, 64 }
  0x22   : > { %p520_p11 = scmp.ne.s32.totalorder %s681_s9, %s519_s20  ;;  %p521_p12 = pneg %p683_p7 }
  0x23   : > { %s524_s23 = scalar_lea.hbm %s733_s0, 128  ;;  %p525_p2 = scmp.lt.s32.totalorder %s681_s9, %s733_s0 }
  0x24   : > { %p522_p13 = pnand %p521_p12, %p520_p11  ;;  %p526_p3 = scmp.lt.s32.totalorder %s524_s23, %s519_s20 }
  0x26   : > { %p523_p0 = pneg %p522_p13  ;;  %p527_p6 = por %p526_p3, %p525_p2 }
  0x28   : > { %p528_p8 = pnand %p527_p6, %p523_p0 }
  0x2a   : > { %531 = shalt.err (!%p528_p8)
}
  0x2b   : > { %s532_s26 = scalar_lea.vmem %s157_s11, 64  ;;  %s590_s27 = smov [#allocation2]  }
  0x2c   : > { %p533_p9 = scmp.ne.s32.totalorder %s157_s11, %s532_s26  ;;  %s537_s28 = sshll.u32 %s590_s27, 4  ;;  %s538_s28 = int_to_ptr.vmem [resolvable:$false] %s537_s28 }
  0x2d   : > { %s539_s29 = scalar_lea.vmem %s538_s28, 128  ;;  %p540_p11 = scmp.lt.s32.totalorder %s157_s11, %s538_s28 }
  0x2e   : > { %p535_p10 = pnand %p533_p9, %p521_p12  ;;  %p541_p13 = scmp.lt.s32.totalorder %s539_s29, %s532_s26 }
  0x30   : > { %p536_p1 = pneg %p535_p10  ;;  %p542_p4 = por %p541_p13, %p540_p11 }
  0x32   : > { %p543_p5 = pnand %p542_p4, %p536_p1 }
  0x34   : > { %546 = shalt.err (!%p543_p5)
}
  0x35   : > { %449 = dma.hbm_to_vmem [thread:$0]  (!%p683_p7), %s681_s9, 64, %s157_s11, %s146_s19  }
  0x36   : > { %p744_p0 = scmp.ne.s32.totalorder %s741_s18, 0 }
  0x37   : > { %s167_s4 = sand.u32 (!%p744_p0), 1, %s577_s13   ;;  %p745_p12 = scmp.ne.s32.totalorder (!%p744_p0), %s740_s17, 0 }
  0x38   : > { %165 = sbr.rel (%p744_p0) target bundleno = 298 (0x12a), region = 32  ;;  %s410_s5 = sshll.u32 (!%p744_p0), %s167_s4, 2 }
  0x39   : > { %s168_s6 = scalar_lea.sflag (!%p744_p0), [#allocation3], %s167_s4  ;;  %s171_s7 = scalar_lea.vmem (!%p744_p0), [#allocation2], %s410_s5 }
  0x3d   : > { %564 = dma.done.wait (%p745_p12), %s168_s6, 64  }
  0x3e   : > { %566 = vsyncadd (%p745_p12), %s168_s6, 4294967232  ;;  %p746_p1 = scmp.eq.s32.totalorder %s632_s16, 0 }
  0x40   : > { %568 = dma.done.wait (%p746_p1), [#allocation5], 128   ;;  %p747_p4 = pmov %p746_p1 }
  0x41   : > { %v591_v0 = vmov 0.0   ;;  %vm592_vm0 = vmmov 0   ;;  %vm220_vm1 = vcmask 1043456   ;;  %v203_v1 = vld [vmem:[#allocation4] sm:$0xf]  ;;  %vm216_vm2 = vcmask 64512  }
  0x42   : > { %570 = vsyncadd (%p747_p4), [#allocation5], 4294967168  ;;  %430 = vmatprep.subr.bf16.mxu1 %v591_v0  ;;  %432 = vmatprep.mubr.msk.bf16.mxu1 %vm592_vm0, %v591_v0  ;;  %v202_v2 = vld [vmem:[%s171_s7] sm:$0xf]  ;;  %v205_v3 = vld [vmem:[#allocation4 + $0x4] sm:$0xf] }
  0x43   : > { %424 = vmatprep.subr.bf16.mxu0 %v591_v0  ;;  %426 = vmatprep.mubr.msk.bf16.mxu0 %vm592_vm0, %v591_v0  ;;  %v268_v4 = vsel %vm220_vm1, %v203_v1, 0  ;;  %v413_v5 = vcombine.low %v202_v2, %v202_v2  ;;  %v222_v6 = vsel %vm220_vm1, %v205_v3, 0  ;;  %v416_v14 = vld [vmem:[%s735_s2] ss:$0 sm:$0xff]  ;;  %p197_p5 = scmp.lt.s32.totalorder %s632_s16, 1  ;;  %vm326_vm4 = vcmask 129024  }
  0x44   : > { %431 = vmatpush3.bf16.msra.mxu1 %v268_v4  ;;  %425 = vmatpush3.bf16.msra.mxu0 %v222_v6 }
  0x45   : > { %v210_v7 = vshrl.u32 %v413_v5, 16  ;;  %v212_v8 = vshll.u32 %v413_v5, 16  ;;  %s753_s16 = smov (!%p197_p5, %s632_s16), 1 }
  0x46   : > { %s412_s8 = sshll.u32 %s753_s16, 3 }
  0x47   : > { %v214_v9 = vrot.slane %v212_v8, 1  ;;  %433 = vmatmul.mubr.msk.bf16.vlgmr.msra.gmra.mxu1 %vm216_vm2, %v202_v2  ;;  %s200_s11 = scalar_lea.vmem %s736_s3, %s412_s8 }
  0x49   : > { %v215_v10 = vor.u32 %v214_v9, %v210_v7 }
  0x4b   : > { %427 = vmatmul.mubr.msk.bf16.vlgmr.msra.gmra.mxu0 %vm216_vm2, %v215_v10 }
 0x107   : > { %v304_v11 = vpop.f32.mrf.mxu1 }
 0x109   : > { %v434_v12 = vpop.f32.mrf.mxu1 }
 0x10b   : > { %v258_v13 = vpop.f32.mrf.mxu0  ;;  %v307_v15 = vpop.f32.mrf.mxu1 }
 0x10c   : > { %v305_v16 = vadd.f32 %v304_v11, %v258_v13 }
 0x10d   : > { %v428_v17 = vpop.f32.mrf.mxu0  ;;  %v435_v18 = vpop.f32.mrf.mxu1 }
 0x10e   : > { %v317_v19 = vadd.f32 %v416_v14, %v305_v16 }
 0x10f   : > { %v261_v20 = vpop.f32.mrf.mxu0 }
 0x110   : > { %v318_v21 = vmin.f32 %v317_v19, 0.0  ;;  %vm323_vm3 = vcmp.gt.f32.partialorder %v317_v19, 0.0 }
 0x111   : > { %v429_v22 = vpop.f32.mrf.mxu0 }
 0x112   : > { %v319_v23 = vmul.f32 1.442695, %v318_v21 }
 0x114   : > { %491 = vpow2.f32 %v319_v23 }
 0x121   : > { %v492_v24 = vpop.eup %491 }
 0x122   : > { %v417_v25 = vadd.f32 -1.0, %v492_v24 }
 0x124   : > { %v322_v26 = vmul.f32 1.6732632, %v417_v25 }
 0x126   : > { %v324_v27 = vsel %vm323_vm3, %v317_v19, %v322_v26 }
 0x127   : > { %v325_v28 = vmul.f32 1.050701, %v324_v27 }
 0x129   : > { %327 = vst.msk [vmem:[%s200_s11] sm:$0x7f] %vm326_vm4, %v325_v28 }
 0x12a PF: > { %p14_p7 = scmp.ge.s32.totalorder %s657_s22, 4   ;;  %s748_s12 = smov %s577_s13 }
 0x12b   : > { %s749_s13 = smov %s581_s14  ;;  %s750_s14 = smov %s674_s30 }
 0x12c   : > { %s751_s15 = smov %s657_s22  ;;  %16 = sbr.rel (!%p14_p7) target bundleno = 4 (0x4), region = 77 }
 0x131   :  { %347 = vsyncpa [#allocation3], 1 }
 0x132   :  { %349 = vsyncpa [#allocation3 + $0x1], 1 }
 0x133   :  { %350 = vsyncpa [#allocation5], 1 }

</bundles_post_ra>
